<compile_context>
chip_gen: v7x
topology: tpu7x:2x2x1
jax: 0.10.0
libtpu: 0.0.40
codegen_flags: <defaults>
</compile_context>

<pallas_src>
import jax
import jax.numpy as jnp
from jax.experimental import pallas as pl
from jax.experimental.pallas import tpu as pltpu

IN_FEATURES = 32
LANE = 128      # vreg lane width (last-dim tiling unit)
SUBLANE = 8     # f32 sublane tiling unit (second-to-last dim)


def _round_up(v, m):
    return ((v + m - 1) // m) * m


def lin_relu_kernel(x_ref, w_ref, b_ref, o_ref):
    # One resident batch tile: MXU matmul (f32 accumulation), then VPU
    # bias-add + ReLU -- free filler slots in this HBM-bound regime.
    y = jnp.dot(x_ref[...], w_ref[...], preferred_element_type=jnp.float32)
    o_ref[...] = jnp.maximum(y + b_ref[...], 0.0).astype(o_ref.dtype)


def _pick_batch_tile(B, O_pad, block_b):
    """Pick the batch tile bt.

    VMEM footprint per grid step (f32, bytes), with lane padding accounted for:
      x tile  (bt, 32)   -> lane-padded to (bt, 128):  bt * 128 * 4 per copy
      out tile(bt, O_pad):                             bt * O_pad * 4 per copy
    both double-buffered; weight (32, O_pad) and bias are small.
    Budget is kept at 24 MiB: well under half of v7x's 64 MiB/TC physical VMEM
    (and trivially fine on v5e/v6e's 128 MiB).
    """
    itembytes = 4
    budget = 24 * 1024 * 1024
    fixed = 2 * itembytes * (IN_FEATURES * O_pad + SUBLANE * O_pad)  # weight + bias
    per_row = 2 * itembytes * (LANE + O_pad)  # double-buffered x + out, per batch row
    bt_cap = max(SUBLANE, (budget - fixed) // per_row)
    bt_cap = (bt_cap // SUBLANE) * SUBLANE

    if B <= SUBLANE:
        return B  # full-extent block (allowed even when not a multiple of 8)

    if B <= block_b:
        # Split the single-tile path into >=2 steps so both v7x TensorCores get
        # work under dimension_semantics=("parallel",); no-op cost on
        # single-TC v5e/v6e.
        bt = _round_up(pl.cdiv(B, 2), SUBLANE)
        return min(bt, bt_cap)

    bt = min((block_b // SUBLANE) * SUBLANE, bt_cap)
    # Prefer a tile that divides B so the last grid step is not a ragged,
    # masked, overhead-dominated partial tile.
    for cand in range(bt, SUBLANE - 1, -SUBLANE):
        if B % cand == 0:
            return cand
    return bt


def lin_relu_forward(x, weight, bias, *, block_b=4096):
    """x: [B, 32], weight: [32, O] (= PyTorch weight.T), bias: [O]."""
    B, F = x.shape
    assert F == IN_FEATURES
    O = weight.shape[1]

    # Lane-dense output: pad O to the next multiple of 128 so output stores are
    # unmasked vst (single biggest measured lever); slice back after the call.
    O_pad = _round_up(O, LANE)
    if O_pad != O:
        weight = jnp.pad(weight, ((0, 0), (0, O_pad - O)))
        bias = jnp.pad(bias, (0, O_pad - O))
    bias2d = bias.reshape(1, O_pad)

    bt = _pick_batch_tile(B, O_pad, block_b)
    grid = (pl.cdiv(B, bt),)

    cost = pl.CostEstimate(
        flops=2 * B * F * O_pad,
        transcendentals=0,
        bytes_accessed=4 * (B * F + F * O_pad + O_pad + B * O_pad),
    )

    out = pl.pallas_call(
        lin_relu_kernel,
        out_shape=jax.ShapeDtypeStruct((B, O_pad), x.dtype),
        grid=grid,
        in_specs=[
            # x/out tiles walk the batch axis; weight & bias stay resident.
            pl.BlockSpec((bt, F), lambda i: (i, 0)),
            pl.BlockSpec((F, O_pad), lambda i: (0, 0)),
            pl.BlockSpec((1, O_pad), lambda i: (0, 0)),
        ],
        out_specs=pl.BlockSpec((bt, O_pad), lambda i: (i, 0)),
        compiler_params=pltpu.CompilerParams(
            # Batch tiles are independent rows -> shard across both v7x TCs.
            dimension_semantics=("parallel",),
            # Large tiles exceed the default scoped-VMEM limit (16 MiB on v5e);
            # 32 MiB covers the 24 MiB tile budget with headroom and stays
            # <= half of physical VMEM on every generation (64 MiB/TC on v7x).
            vmem_limit_bytes=32 * 1024 * 1024,
        ),
        cost_estimate=cost,
    )(x, weight, bias2d)

    return out if O_pad == O else out[:, :O]


if __name__ == "__main__":
    B = 256             # small demo batch
    OUT_FEATURES = 128  # already lane-dense (multiple of 128)

    key = jax.random.PRNGKey(0)
    kx, kw, kb = jax.random.split(key, 3)

    x = jax.random.normal(kx, (B, IN_FEATURES), dtype=jnp.float32)

    # Deterministic nn.Linear(32, out_features)-style init.
    bound = 1.0 / (IN_FEATURES ** 0.5)
    w_pt = jax.random.uniform(kw, (OUT_FEATURES, IN_FEATURES),
                              minval=-bound, maxval=bound, dtype=jnp.float32)
    bias = jax.random.uniform(kb, (OUT_FEATURES,),
                              minval=-bound, maxval=bound, dtype=jnp.float32)
    weight = w_pt.T  # [32, O] so the kernel computes x @ W == x @ w_pt.T

    # With B=256 <= block_b, the tile picker splits into 2 steps of 128 rows,
    # exercising the tiled path (and the v7x two-TC split) even at demo size.
    out = lin_relu_forward(x, weight, bias)
    jax.block_until_ready(out)

    # Reference check in plain JAX (same math as the PyTorch forward).
    ref = jnp.maximum(x @ weight + bias, 0.0)
    assert out.shape == (B, OUT_FEATURES)
    assert jnp.allclose(out, ref, atol=1e-5, rtol=1e-5)

    print("KERNEL_OK")
</pallas_src>

<mosaic_0001>
module attributes {stable_mosaic.version = 11 : i64} {
  func.func @lin_relu_kernel(%arg0: i32, %arg1: memref<128x32xf32, #tpu.memory_space<vmem>>, %arg2: memref<32x128xf32, #tpu.memory_space<vmem>>, %arg3: memref<1x128xf32, #tpu.memory_space<vmem>>, %arg4: memref<128x128xf32, #tpu.memory_space<vmem>>) attributes {dimension_semantics = [#tpu.dimension_semantics<parallel>], iteration_bounds = array<i64: 2>, scalar_prefetch = 0 : i64, scratch_operands = 0 : i64, tpu.core_type = #tpu.core_type<tc>, window_params = [{transform_indices = @transform_0, window_bounds = array<i64: 128, 32>}, {pipeline_mode = #tpu.pipeline_mode<synchronous>, transform_indices = @transform_1, window_bounds = array<i64: 32, 128>}, {pipeline_mode = #tpu.pipeline_mode<synchronous>, transform_indices = @transform_2, window_bounds = array<i64: 1, 128>}, {transform_indices = @transform_3, window_bounds = array<i64: 128, 128>}]} {
    %c0 = arith.constant 0 : index
    %c0_0 = arith.constant 0 : index
    %0 = vector.load %arg1[%c0, %c0_0] : memref<128x32xf32, #tpu.memory_space<vmem>>, vector<128x32xf32>
    %c0_1 = arith.constant 0 : index
    %c0_2 = arith.constant 0 : index
    %1 = vector.load %arg2[%c0_1, %c0_2] : memref<32x128xf32, #tpu.memory_space<vmem>>, vector<32x128xf32>
    %cst = arith.constant dense<0.000000e+00> : vector<128x128xf32>
    %2 = tpu.matmul %0, %1, %cst {dimension_numbers = #tpu.dot_dimension_numbers<[1], [0], [0], [1], [0, 0, 1, 1], [], []>} : vector<128x32xf32>, vector<32x128xf32>, vector<128x128xf32> -> vector<128x128xf32>
    %c0_3 = arith.constant 0 : index
    %c0_4 = arith.constant 0 : index
    %3 = vector.load %arg3[%c0_3, %c0_4] : memref<1x128xf32, #tpu.memory_space<vmem>>, vector<1x128xf32>
    %4 = vector.broadcast %3 : vector<1x128xf32> to vector<128x128xf32>
    %5 = arith.addf %2, %4 : vector<128x128xf32>
    %cst_5 = arith.constant 0.000000e+00 : f32
    %6 = vector.broadcast %cst_5 : f32 to vector<128x128xf32>
    %7 = arith.maximumf %5, %6 : vector<128x128xf32>
    %c0_6 = arith.constant 0 : index
    %c0_7 = arith.constant 0 : index
    %8 = vector.load %arg4[%c0_6, %c0_7] : memref<128x128xf32, #tpu.memory_space<vmem>>, vector<128x128xf32>
    tpu.vector_store %arg4[%c0_6, %c0_7], %7 {strides = array<i32>} : memref<128x128xf32, #tpu.memory_space<vmem>>, vector<128x128xf32>,
    return
  }
  func.func @transform_0(%arg0: i32) -> (i32, i32) {
    %c0_i32 = arith.constant 0 : i32
    %c0_i32_0 = arith.constant 0 : i32
    return %arg0, %c0_i32 : i32, i32
  }
  func.func @transform_1(%arg0: i32) -> (i32, i32) {
    %c0_i32 = arith.constant 0 : i32
    %c0_i32_0 = arith.constant 0 : i32
    %c0_i32_1 = arith.constant 0 : i32
    return %c0_i32, %c0_i32_0 : i32, i32
  }
  func.func @transform_2(%arg0: i32) -> (i32, i32) {
    %c0_i32 = arith.constant 0 : i32
    %c0_i32_0 = arith.constant 0 : i32
    %c0_i32_1 = arith.constant 0 : i32
    return %c0_i32, %c0_i32_0 : i32, i32
  }
  func.func @transform_3(%arg0: i32) -> (i32, i32) {
    %c0_i32 = arith.constant 0 : i32
    %c0_i32_0 = arith.constant 0 : i32
    return %arg0, %c0_i32 : i32, i32
  }
}

</mosaic_0001>

<bundles_post_ra>
// kernel: tpu_custom_call.1
= control target key start
LH: loop header
LB: loop body
LE: loop exit
PB: predicated region body
PF: predicated region fallthrough
CT: control target
= control target key end

     0   :  { %8 = vsyncpa [#allocation3], 0  ;;  %s897_s0 = inlined_call_operand.vmem [shape: f32[256,32], index: 0, kind: input, shape index: {}]   ;;  %s898_s1 = inlined_call_operand.vmem [shape: f32[32,128], index: 1, kind: input, shape index: {}]   ;;  %s899_s2 = inlined_call_operand.vmem [shape: f32[1,128], index: 2, kind: input, shape index: {}]   ;;  %s900_s3 = inlined_call_operand.hbm [shape: f32[256,128], index: 3, kind: output, shape index: {}]  }
   0x1   :  { %10 = vsyncpa [#allocation3 + $0x1], 0  ;;  %s723_s12 = smov 0   ;;  %s725_s13 = smov 0  }
   0x2   :  { %s727_s14 = smov 0   ;;  %s729_s15 = smov 0  }
   0x3 LB: > { %s744_s16 = sadd.s32 4294967295, %s698_s15   ;;  %s501_s17 = sadd.s32 4294967294, %s698_s15   ;;  %s698_s15 = sphi %s729_s15, %s906_s15   ;;  %s694_s14 = sphi %s727_s14, %s905_s14   ;;  %s690_s13 = sphi %s725_s13, %s904_s13   ;;  %s686_s12 = sphi %s723_s12, %s903_s12  }
   0x4   : > { %s748_s18 = sadd.s32 1, %s698_s15   ;;  %s91_s19 = sadd.s32 1, %s694_s14 }
   0x5   : > { %s88_s20 = ssub.s32 %s698_s15, %s748_s18  ;;  %p101_p0 = scmp.ne.s32.totalorder %s694_s14, %s690_s13 }
   0x6   : > { %p89_p1 = scmp.eq.s32.totalorder %s88_s20, 0  ;;  %p102_p2 = scmp.eq.s32.totalorder %s744_s16, 1 }
   0x7   : > { %p107_p3 = scmp.ne.s32.totalorder %s690_s13, %s686_s12  ;;  %p108_p4 = scmp.eq.s32.totalorder %s501_s17, 1 }
   0x8   : > { %s759_s21 = scalar_select %p89_p1, %s694_s14, %s91_s19  }
   0x9   : > { %p761_p5 = por %p102_p2, %p101_p0  ;;  %p765_p6 = por %p108_p4, %p107_p3 }
   0xa   : > { %p504_p7 = scmp.ge.s32.totalorder %s698_s15, 1  ;;  %p141_p8 = scmp.lt.s32.totalorder %s698_s15, 3 }
   0xc   : > { %p142_p9 = pnand %p504_p7, %p141_p8 }
   0xd   : > { %v188_v0 = vld [vmem:[%s898_s1] sm:$0xff] (!%p142_p9)  ;;  %v189_v1 = vld [vmem:[%s898_s1 + $0x8] sm:$0xff] (!%p142_p9)  ;;  %v190_v2 = vld [vmem:[%s898_s1 + $0x10] sm:$0xff] (!%p142_p9)  ;;  %s506_s30 = sshll.u32 (!%p142_p9), %s744_s16, 4  ;;  %vm199_vm0 = vcmask (!%p142_p9), 261120   ;;  %s162_s10 = sand.u32 (!%p142_p9), 1, %s690_s13  }
   0xe   : > { %145 = sbr.rel (%p142_p9) target bundleno = 271 (0x10f), region = 32  ;;  %v583_v3 = vpack.c.bf16 (!%p142_p9), %v189_v1, %v188_v0  ;;  %v191_v4 = vld [vmem:[%s898_s1 + $0x18] sm:$0xff] (!%p142_p9)  ;;  %p166_p10 = scmp.lt.s32.totalorder (!%p142_p9), %s506_s30, 31  ;;  %v508_v22 = vld [vmem:[%s899_s2] ss:$0 sm:$0xff] (!%p142_p9) }
   0xf   : > { %v587_v5 = vpack.c.bf16 (!%p142_p9), %v191_v4, %v190_v2  ;;  %s505_s19 = sshll.u32 (!%p142_p9), %s162_s10, 7  ;;  %s530_s24 = sshll.u32 (!%p142_p9), %s744_s16, 11 }
  0x10   : > { %584 = vmatprep.subr.bf16.mxu0 (!%p142_p9), %v583_v3  ;;  %591 = vmatprep.subr.bf16.mxu1 (!%p142_p9), %v583_v3  ;;  %s827_s20 = scalar_lea.vmem (!%p142_p9), [#allocation2], %s505_s19  ;;  %s846_s27 = scalar_lea.hbm (!%p142_p9), %s900_s3, %s530_s24 }
  0x11   : > { %586 = vmatpush3.bf16.msra.mxu0 (!%p142_p9), %v583_v3  ;;  %593 = vmatpush3.bf16.msra.mxu1 (!%p142_p9), %v583_v3  ;;  %s439_s25 = sshll.u32 (!%p142_p9), %s827_s20, 4  ;;  %s856_s28 = scalar_lea.sflag (!%p142_p9), [#allocation3], %s162_s10  ;;  %s848_s25 = int_to_ptr.vmem [resolvable:$true] %s439_s25 }
  0x12   : > { %588 = vmatprep.subr.bf16.mxu0 (!%p142_p9), %v587_v5  ;;  %592 = vmatprep.subr.bf16.mxu1 (!%p142_p9), %v587_v5  ;;  %s636_s29 = scalar_lea.vmem (!%p142_p9), %s848_s25, 2048 }
  0x13   : > { %p637_p11 = scmp.ne.s32.totalorder (!%p142_p9), %s848_s25, %s636_s29 }
  0x15   : > { %s908_s30 = smov (!%p166_p10, %s506_s30), 31  ;;  %590 = vmatpush3.bf16.msra.mxu0 %v587_v5  ;;  %594 = vmatpush3.bf16.msra.mxu1 %v587_v5  ;;  %p638_p12 = pnand %p637_p11, %p761_p5 }
  0x16   : > { %s507_s6 = sshll.u32 %s908_s30, 3  ;;  %s700_s30 = smov [#allocation2]  }
  0x17   : > { %s787_s9 = scalar_lea.vmem %s897_s0, %s507_s6  ;;  %p639_p13 = pneg %p638_p12 }
  0x18   : > { %v172_v6 = vld [vmem:[%s787_s9] sm:$0xff]  ;;  %v173_v8 = vld [vmem:[%s787_s9 + $0x8] sm:$0xff]  ;;  %v174_v10 = vld [vmem:[%s787_s9 + $0x10] sm:$0xff]  ;;  %s640_s4 = sshll.u32 %s700_s30, 4  ;;  %s641_s4 = int_to_ptr.vmem [resolvable:$false] %s640_s4 }
  0x19   : > { %v180_v7 = vld [vmem:[%s787_s9 + $0x40] sm:$0xff]  ;;  %v181_v9 = vld [vmem:[%s787_s9 + $0x48] sm:$0xff]  ;;  %559 = vmatprep.mubr.msk.f32.mxu0 %vm199_vm0, %v172_v6  ;;  %v182_v11 = vld [vmem:[%s787_s9 + $0x50] sm:$0xff]  ;;  %s642_s5 = scalar_lea.vmem %s641_s4, 4096  ;;  %p643_p0 = scmp.lt.s32.totalorder %s848_s25, %s641_s4 }
  0x1a   : > { %571 = vmatprep.mubr.msk.f32.mxu1 %vm199_vm0, %v180_v7  ;;  %560 = vmatmul.mubr.msk.f32.vlgmr.msra.gmra.mrb[0].mxu0 %vm199_vm0, %v173_v8  ;;  %v175_v12 = vld [vmem:[%s787_s9 + $0x18] sm:$0xff]  ;;  %v176_v14 = vld [vmem:[%s787_s9 + $0x20] sm:$0xff]  ;;  %v177_v16 = vld [vmem:[%s787_s9 + $0x28] sm:$0xff]  ;;  %p644_p1 = scmp.lt.s32.totalorder %s642_s5, %s636_s29 }
  0x1b   : > { %572 = vmatmul.mubr.msk.f32.vlgmr.msra.gmra.mrb[0].mxu1 %vm199_vm0, %v181_v9  ;;  %562 = vmatprep.mubr.msk.f32.mxu0 %vm199_vm0, %v174_v10  ;;  %v183_v13 = vld [vmem:[%s787_s9 + $0x58] sm:$0xff]  ;;  %v184_v15 = vld [vmem:[%s787_s9 + $0x60] sm:$0xff]  ;;  %v185_v17 = vld [vmem:[%s787_s9 + $0x68] sm:$0xff] }
  0x1c   : > { %574 = vmatprep.mubr.msk.f32.mxu1 %vm199_vm0, %v182_v11  ;;  %v178_v18 = vld [vmem:[%s787_s9 + $0x30] sm:$0xff]  ;;  %v179_v20 = vld [vmem:[%s787_s9 + $0x38] sm:$0xff]  ;;  %p645_p2 = por %p644_p1, %p643_p0 }
  0x1d   : > { %v186_v19 = vld [vmem:[%s787_s9 + $0x70] sm:$0xff]  ;;  %v187_v21 = vld [vmem:[%s787_s9 + $0x78] sm:$0xff] }
  0x1e   : > { %563 = vmatmul.mubr.msk.f32.gmra.mrb[2].mxu0 %vm199_vm0, %v175_v12  ;;  %p646_p3 = pnand %p645_p2, %p639_p13 }
  0x1f   : > { %575 = vmatmul.mubr.msk.f32.gmra.mrb[2].mxu1 %vm199_vm0, %v183_v13  ;;  %565 = vmatprep.mubr.msk.f32.mxu0 %vm199_vm0, %v176_v14 }
  0x20   : > { %577 = vmatprep.mubr.msk.f32.mxu1 %vm199_vm0, %v184_v15 }
  0x22   : > { %566 = vmatmul.mubr.msk.f32.gmra.mrb[4].mxu0 %vm199_vm0, %v177_v16 }
  0x23   : > { %578 = vmatmul.mubr.msk.f32.gmra.mrb[4].mxu1 %vm199_vm0, %v185_v17  ;;  %568 = vmatprep.mubr.msk.f32.mxu0 %vm199_vm0, %v178_v18 }
  0x24   : > { %580 = vmatprep.mubr.msk.f32.mxu1 %vm199_vm0, %v186_v19 }
  0x26   : > { %569 = vmatmul.mubr.msk.f32.gmra.mrb[6].mxu0 %vm199_vm0, %v179_v20 }
  0x27   : > { %581 = vmatmul.mubr.msk.f32.gmra.mrb[6].mxu1 %vm199_vm0, %v187_v21 }
  0xed   : > { %v561_v23 = vpop.f32.mrb[0].mxu0 }
  0xee   : > { %v573_v24 = vpop.f32.mrb[0].mxu1  ;;  %v320_v25 = vadd.f32 %v561_v23, %v508_v22  ;;  %v314_v27 = vpop.f32.mrb[1].mxu0 }
  0xef   : > { %v360_v26 = vadd.f32 %v573_v24, %v508_v22  ;;  %v354_v28 = vpop.f32.mrb[1].mxu1  ;;  %v315_v29 = vadd.f32 %v508_v22, %v314_v27 }
  0xf0   : > { %v355_v30 = vadd.f32 %v508_v22, %v354_v28  ;;  %v394_v31 = vmax.f32 %v320_v25, 0.0 }
  0xf1   : > { %v402_v32 = vmax.f32 %v360_v26, 0.0  ;;  %v393_v33 = vmax.f32 %v315_v29, 0.0  ;;  %v564_v35 = vpop.f32.mrb[2].mxu0 }
  0xf2   : > { %v401_v34 = vmax.f32 %v355_v30, 0.0  ;;  %v576_v36 = vpop.f32.mrb[2].mxu1  ;;  %410 = vst [vmem:[%s827_s20 + $0x8] sm:$0xff] %v394_v31  ;;  %v330_v37 = vadd.f32 %v564_v35, %v508_v22  ;;  %v324_v39 = vpop.f32.mrb[3].mxu0 }
  0xf3   : > { %418 = vst [vmem:[%s827_s20 + $0x48] sm:$0xff] %v402_v32  ;;  %v370_v38 = vadd.f32 %v576_v36, %v508_v22  ;;  %v364_v40 = vpop.f32.mrb[3].mxu1  ;;  %409 = vst [vmem:[%s827_s20] sm:$0xff] %v393_v33  ;;  %v325_v41 = vadd.f32 %v508_v22, %v324_v39 }
  0xf4   : > { %417 = vst [vmem:[%s827_s20 + $0x40] sm:$0xff] %v401_v34  ;;  %v365_v42 = vadd.f32 %v508_v22, %v364_v40  ;;  %v396_v43 = vmax.f32 %v330_v37, 0.0 }
  0xf5   : > { %v404_v44 = vmax.f32 %v370_v38, 0.0  ;;  %v395_v45 = vmax.f32 %v325_v41, 0.0  ;;  %v567_v47 = vpop.f32.mrb[4].mxu0 }
  0xf6   : > { %v403_v46 = vmax.f32 %v365_v42, 0.0  ;;  %v579_v48 = vpop.f32.mrb[4].mxu1  ;;  %412 = vst [vmem:[%s827_s20 + $0x18] sm:$0xff] %v396_v43  ;;  %v340_v49 = vadd.f32 %v567_v47, %v508_v22  ;;  %v334_v51 = vpop.f32.mrb[5].mxu0 }
  0xf7   : > { %420 = vst [vmem:[%s827_s20 + $0x58] sm:$0xff] %v404_v44  ;;  %v380_v50 = vadd.f32 %v579_v48, %v508_v22  ;;  %v374_v52 = vpop.f32.mrb[5].mxu1  ;;  %411 = vst [vmem:[%s827_s20 + $0x10] sm:$0xff] %v395_v45  ;;  %v335_v53 = vadd.f32 %v508_v22, %v334_v51 }
  0xf8   : > { %419 = vst [vmem:[%s827_s20 + $0x50] sm:$0xff] %v403_v46  ;;  %v375_v54 = vadd.f32 %v508_v22, %v374_v52  ;;  %v398_v55 = vmax.f32 %v340_v49, 0.0 }
  0xf9   : > { %v406_v56 = vmax.f32 %v380_v50, 0.0  ;;  %v397_v57 = vmax.f32 %v335_v53, 0.0  ;;  %v570_v59 = vpop.f32.mrb[6].mxu0 }
  0xfa   : > { %v405_v58 = vmax.f32 %v375_v54, 0.0  ;;  %v582_v60 = vpop.f32.mrb[6].mxu1  ;;  %414 = vst [vmem:[%s827_s20 + $0x28] sm:$0xff] %v398_v55  ;;  %v350_v61 = vadd.f32 %v570_v59, %v508_v22  ;;  %v344_v63 = vpop.f32.mrb[7].mxu0 }
  0xfb   : > { %422 = vst [vmem:[%s827_s20 + $0x68] sm:$0xff] %v406_v56  ;;  %v390_v62 = vadd.f32 %v582_v60, %v508_v22  ;;  %v384_v0 = vpop.f32.mrb[7].mxu1  ;;  %413 = vst [vmem:[%s827_s20 + $0x20] sm:$0xff] %v397_v57  ;;  %v345_v1 = vadd.f32 %v508_v22, %v344_v63 }
  0xfc   : > { %421 = vst [vmem:[%s827_s20 + $0x60] sm:$0xff] %v405_v58  ;;  %v385_v2 = vadd.f32 %v508_v22, %v384_v0  ;;  %v400_v3 = vmax.f32 %v350_v61, 0.0 }
  0xfd   : > { %v408_v4 = vmax.f32 %v390_v62, 0.0  ;;  %v399_v5 = vmax.f32 %v345_v1, 0.0 }
  0xfe   : > { %v407_v6 = vmax.f32 %v385_v2, 0.0  ;;  %416 = vst [vmem:[%s827_s20 + $0x38] sm:$0xff] %v400_v3 }
  0xff   : > { %424 = vst [vmem:[%s827_s20 + $0x78] sm:$0xff] %v408_v4  ;;  %415 = vst [vmem:[%s827_s20 + $0x30] sm:$0xff] %v399_v5 }
 0x100   : > { %423 = vst [vmem:[%s827_s20 + $0x70] sm:$0xff] %v407_v6 }
 0x101   : > { %649 = shalt.err (!%p646_p3)
}
 0x102   : > { %s650_s6 = scalar_lea.hbm %s846_s27, 2048  ;;  %s654_s9 = scalar_lea.hbm %s900_s3, 4096 }
 0x103   : > { %p651_p4 = scmp.ne.s32.totalorder %s846_s27, %s650_s6  ;;  %p655_p9 = scmp.lt.u32.totalorder %s846_s27, %s900_s3 }
 0x104   : > { %p656_p10 = scmp.lt.u32.totalorder %s654_s9, %s650_s6  ;;  %p658_p12 = scmp.lt.u32.totalorder %s650_s6, %s846_s27 }
 0x105   : > { %p652_p7 = pnand %p651_p4, %p761_p5 }
 0x106   : > { %p657_p11 = por %p656_p10, %p655_p9 }
 0x107   : > { %p653_p8 = pneg %p652_p7 }
 0x108   : > { %p659_p13 = por %p658_p12, %p657_p11 }
 0x10a   : > { %p660_p0 = pnand %p659_p13, %p653_p8 }
 0x10c   : > { %663 = shalt.err (!%p660_p0)
}
 0x10d   : > { %s701_s17 = smov 128   ;;  %s702_s19 = smov 8  }
 0x10e   : > { %595 = dma.vmem_to_hbm [thread:$0]  (%p761_p5), %s848_s25, 2048, %s846_s27, %s856_s28, %s701_s17, %s701_s17, %s702_s19  }
 0x10f PF: > { %p601_p1 = scmp.ge.s32.totalorder %s698_s15, 2  ;;  %s454_s20 = sand.u32 1, %s686_s12  }
 0x110   : > { %s455_s24 = scalar_lea.sflag [#allocation3], %s454_s20 }
 0x111   : > { %p598_p2 = pnand %p601_p1, %p765_p6 }
 0x113   : > { %681 = dma.done.wait (!%p598_p2), %s455_s24, 2048  }
 0x114   : > { %683 = vsyncadd (!%p598_p2), %s455_s24, 4294965248  ;;  %p13_p3 = scmp.ge.s32.totalorder %s748_s18, 4   ;;  %s903_s12 = smov %s690_s13 }
 0x115   : > { %s904_s13 = smov %s694_s14  ;;  %s905_s14 = smov %s759_s21 }
 0x116   : > { %s906_s15 = smov %s748_s18  ;;  %15 = sbr.rel (!%p13_p3) target bundleno = 3 (0x3), region = 67 }
 0x11d   :  { %460 = vsyncpa [#allocation3], 1 }
 0x11e   :  { %462 = vsyncpa [#allocation3 + $0x1], 1 }

</bundles_post_ra>
